<compile_context>
chip_gen: v7x
topology: tpu7x:2x2x1
jax: 0.10.0
libtpu: 0.0.40
codegen_flags: <defaults>
</compile_context>

<pallas_src>
import jax
import jax.numpy as jnp
from jax.experimental import pallas as pl
from jax.experimental.pallas import tpu as pltpu


# The concrete lambda to run.  LambdaModule's forward is exactly this applied
# to x.  Any jnp-traceable *elementwise* function works.
# TODO(synk): LambdaModule takes forward_lambda at construction time; the
# specific lambda is user code, so we pick a representative elementwise one.
FORWARD_LAMBDA = lambda x: 2.0 * x + 1.0

_MIN_PALLAS_BYTES = 64 * 1024          # below this, plain fused jnp wins
_VMEM_TILE_BUDGET_BYTES = 8 * 1024 * 1024  # live bytes for 2x (in + out) tiles


def _lambda_kernel(x_ref, o_ref):
    # Elementwise hot path: load the whole VMEM tile, apply the lambda, store.
    o_ref[...] = FORWARD_LAMBDA(x_ref[...]).astype(o_ref.dtype)


def _round_up(a, b):
    return -(-a // b) * b


def lambda_module_forward(x):
    """Pallas implementation of LambdaModule(forward_lambda).forward(x).

    x: any-shaped array (example: NCHW [N, C, H, W]).
    Returns forward_lambda(x) with jnp dtype-promotion semantics.
    The Pallas path requires FORWARD_LAMBDA to be strictly elementwise
    (shape-preserving); this is asserted below.
    """
    orig_shape = tuple(x.shape)
    total = int(x.size)

    out_sds = jax.eval_shape(
        FORWARD_LAMBDA, jax.ShapeDtypeStruct(x.shape, x.dtype)
    )
    assert tuple(out_sds.shape) == orig_shape, (
        "FORWARD_LAMBDA must be elementwise (shape-preserving) for the "
        "Pallas path"
    )
    out_dtype = out_sds.dtype

    in_itemsize = jnp.dtype(x.dtype).itemsize
    out_itemsize = jnp.dtype(out_dtype).itemsize

    # Small / empty inputs: plain jnp.  XLA fuses the elementwise lambda for
    # free; Pallas launch + per-step overhead could never win here.
    if total == 0 or total * in_itemsize < _MIN_PALLAS_BYTES:
        return FORWARD_LAMBDA(x)

    # Pick the widest lane-dense slab width (multiple of 128) that divides the
    # element count, so the 2D re-layout is a zero-copy reshape (no pad/slice
    # and no extra HBM passes).
    lane = None
    for cand in (512, 256, 128):
        if total % cand == 0:
            lane = cand
            break
    if lane is None:
        # TODO(synk): ragged element counts (total % 128 != 0).  Running the
        # kernel over the aligned bulk and re-joining with the jnp tail needs
        # a concatenate (an extra full HBM pass over the bulk), which is
        # strictly slower than the fused 1-read/1-write jnp op, so fall back.
        return FORWARD_LAMBDA(x)

    rows = total // lane

    # Sublane packing from the wider-packed of in/out dtypes (8 rows for
    # 4-byte, 16 for 2-byte, 32 for 1-byte dtypes) so both the load and the
    # store tiles are unmasked full vregs.
    pack = max(8, 32 // in_itemsize, 32 // out_itemsize)

    # Tile-row selection:
    #   * byte budget keeps 2x double-buffered (in + out) tiles ~<= 8 MiB live
    #     (safe under v5e's 16 MiB default scoped VMEM; big enough to amortize
    #     per-step overhead on v7x's faster HBM).
    #   * prefer >= 2 grid steps so v7x's two TensorCores both stream.
    per_row_bytes = lane * (in_itemsize + out_itemsize)
    cap = max(pack,
              (_VMEM_TILE_BUDGET_BYTES // (2 * per_row_bytes)) // pack * pack)
    if rows <= pack:
        tile_rows = rows            # block dim == full array dim is legal
    else:
        half = _round_up(pl.cdiv(rows, 2), pack)
        tile_rows = min(cap, half)
    grid = (pl.cdiv(rows, tile_rows),)

    x2d = x.reshape(rows, lane)     # zero-copy: contiguous flatten

    cost = pl.CostEstimate(
        flops=2 * total,
        transcendentals=0,
        bytes_accessed=total * (in_itemsize + out_itemsize),
    )

    out2d = pl.pallas_call(
        _lambda_kernel,
        out_shape=jax.ShapeDtypeStruct((rows, lane), out_dtype),
        grid=grid,
        in_specs=[pl.BlockSpec((tile_rows, lane), lambda i: (i, 0))],
        out_specs=pl.BlockSpec((tile_rows, lane), lambda i: (i, 0)),
        compiler_params=pltpu.CompilerParams(
            dimension_semantics=("parallel",),
        ),
        cost_estimate=cost,
    )(x2d)

    return out2d.reshape(orig_shape)


if __name__ == "__main__":
    key = jax.random.PRNGKey(0)
    k1, k2, k3 = jax.random.split(key, 3)

    # 1) Tiny NCHW feature map (small-input bypass path).
    x_small = jax.random.normal(k1, (2, 4, 16, 16), dtype=jnp.float32)
    # 2) Larger lane-dense feature map -> exercises the Pallas kernel path
    #    (rows=128, lane=512, tile_rows=64, grid=(2,)).
    x_big = jax.random.normal(k2, (2, 8, 64, 64), dtype=jnp.float32)
    # 3) Ragged element count (not a multiple of 128) -> jnp fallback path.
    x_ragged = jax.random.normal(k3, (3, 5, 7, 11), dtype=jnp.float32)

    for x in (x_small, x_big, x_ragged):
        out = jax.block_until_ready(lambda_module_forward(x))
        ref = FORWARD_LAMBDA(x)
        assert out.shape == ref.shape
        assert out.dtype == ref.dtype
        assert jnp.allclose(out, ref, atol=1e-6, rtol=1e-6)

    print("KERNEL_OK")
</pallas_src>

<mosaic_0001>
module attributes {stable_mosaic.version = 11 : i64} {
  func.func @_lambda_kernel(%arg0: i32, %arg1: memref<64x512xf32, #tpu.memory_space<vmem>>, %arg2: memref<64x512xf32, #tpu.memory_space<vmem>>) attributes {dimension_semantics = [#tpu.dimension_semantics<parallel>], iteration_bounds = array<i64: 2>, scalar_prefetch = 0 : i64, scratch_operands = 0 : i64, tpu.core_type = #tpu.core_type<tc>, window_params = [{transform_indices = @transform_0, window_bounds = array<i64: 64, 512>}, {transform_indices = @transform_1, window_bounds = array<i64: 64, 512>}]} {
    %c0 = arith.constant 0 : index
    %c0_0 = arith.constant 0 : index
    %0 = vector.load %arg1[%c0, %c0_0] : memref<64x512xf32, #tpu.memory_space<vmem>>, vector<64x512xf32>
    %cst = arith.constant 2.000000e+00 : f32
    %1 = vector.broadcast %cst : f32 to vector<64x512xf32>
    %2 = arith.mulf %1, %0 : vector<64x512xf32>
    %cst_1 = arith.constant 1.000000e+00 : f32
    %3 = vector.broadcast %cst_1 : f32 to vector<64x512xf32>
    %4 = arith.addf %2, %3 : vector<64x512xf32>
    %c0_2 = arith.constant 0 : index
    %c0_3 = arith.constant 0 : index
    %5 = vector.load %arg2[%c0_2, %c0_3] : memref<64x512xf32, #tpu.memory_space<vmem>>, vector<64x512xf32>
    tpu.vector_store %arg2[%c0_2, %c0_3], %4 {strides = array<i32>} : memref<64x512xf32, #tpu.memory_space<vmem>>, vector<64x512xf32>,
    return
  }
  func.func @transform_0(%arg0: i32) -> (i32, i32) {
    %c0_i32 = arith.constant 0 : i32
    %c0_i32_0 = arith.constant 0 : i32
    return %arg0, %c0_i32 : i32, i32
  }
  func.func @transform_1(%arg0: i32) -> (i32, i32) {
    %c0_i32 = arith.constant 0 : i32
    %c0_i32_0 = arith.constant 0 : i32
    return %arg0, %c0_i32 : i32, i32
  }
}

</mosaic_0001>

<bundles_post_ra>
// kernel: tpu_custom_call.1
= control target key start
LH: loop header
LB: loop body
LE: loop exit
PB: predicated region body
PF: predicated region fallthrough
CT: control target
= control target key end

     0   :  { %6 = vsyncpa [#allocation3], 0  ;;  %s775_s0 = inlined_call_operand.hbm [shape: f32[128,512], index: 0, kind: input, shape index: {}]   ;;  %s776_s1 = inlined_call_operand.hbm [shape: f32[128,512], index: 1, kind: output, shape index: {}]  }
   0x1   :  { %8 = vsyncpa [#allocation3 + $0x1], 0 }
   0x2   :  { %9 = vsyncpa [#allocation4], 0 }
   0x3   :  { %11 = vsyncpa [#allocation4 + $0x1], 0  ;;  %s538_s6 = smov 0   ;;  %s540_s7 = smov 0  }
   0x4   :  { %s542_s8 = smov 0   ;;  %s544_s9 = smov 0  }
   0x5 LB: > { %s559_s10 = sadd.s32 4294967295, %s520_s9   ;;  %s354_s11 = sadd.s32 4294967294, %s520_s9   ;;  %s520_s9 = sphi %s544_s9, %s789_s9   ;;  %s516_s8 = sphi %s542_s8, %s788_s8   ;;  %s512_s7 = sphi %s540_s7, %s787_s7   ;;  %s508_s6 = sphi %s538_s6, %s786_s6  }
   0x6   : > { %s563_s12 = sadd.s32 1, %s520_s9   ;;  %s24_s13 = sadd.s32 1, %s516_s8 }
   0x7   : > { %s21_s14 = ssub.s32 %s520_s9, %s563_s12  ;;  %p31_p0 = scmp.ne.s32.totalorder %s516_s8, %s512_s7 }
   0x8   : > { %p22_p1 = scmp.eq.s32.totalorder %s21_s14, 0  ;;  %p32_p2 = scmp.eq.s32.totalorder %s520_s9, 0 }
   0x9   : > { %p37_p3 = scmp.ne.s32.totalorder %s512_s7, %s508_s6  ;;  %p38_p4 = scmp.eq.s32.totalorder %s559_s10, 0 }
   0xa   : > { %s575_s15 = scalar_select %p22_p1, %s516_s8, %s24_s13  }
   0xb   : > { %p577_p5 = por %p32_p2, %p31_p0  ;;  %p581_p6 = por %p38_p4, %p37_p3 }
   0xc   : > { %p61_p7 = scmp.eq.s32.totalorder %s559_s10, 1  ;;  %p67_p8 = scmp.eq.s32.totalorder %s354_s11, 1 }
   0xd   : > { %p386_p10 = scmp.lt.s32.totalorder %s520_s9, 2  ;;  %s87_s20 = sand.u32 1, %s516_s8  }
   0xe   : > { %p588_p11 = por %p61_p7, %p31_p0  ;;  %p592_p12 = por %p67_p8, %p37_p3 }
   0xf   : > { %s371_s21 = sshll.u32 %s520_s9, 12  ;;  %s357_s22 = sshll.u32 %s87_s20, 8 }
  0x10   : > { %s780_s18 = scalar_select %p588_p11, 1, 0 }
  0x11   : > { %s781_s19 = scalar_select %p592_p12, 1, 0 }
  0x12   : > { %s601_s25 = scalar_lea.hbm %s775_s0, %s371_s21  ;;  %s91_s26 = scalar_lea.vmem [#allocation2], %s357_s22 }
  0x13   : > { %s99_s27 = sshll.u32 %s91_s26, 4  ;;  %p605_p13 = pnand %p386_p10, %p577_p5  ;;  %s609_s27 = int_to_ptr.vmem [resolvable:$true] %s99_s27 }
  0x14   : > { %s611_s29 = scalar_lea.sflag [#allocation3], %s87_s20  ;;  %s424_s30 = scalar_lea.hbm %s601_s25, 4096 }
  0x15   : > { %p425_p0 = scmp.ne.s32.totalorder %s601_s25, %s424_s30  ;;  %p426_p1 = pneg %p605_p13 }
  0x16   : > { %s429_s4 = scalar_lea.hbm %s775_s0, 8192  ;;  %p430_p4 = scmp.lt.u32.totalorder %s601_s25, %s775_s0 }
  0x17   : > { %p427_p2 = pnand %p426_p1, %p425_p0  ;;  %p431_p5 = scmp.lt.u32.totalorder %s429_s4, %s424_s30 }
  0x18   : > { %p433_p8 = scmp.lt.u32.totalorder %s424_s30, %s601_s25 }
  0x19   : > { %p428_p3 = pneg %p427_p2  ;;  %p432_p7 = por %p431_p5, %p430_p4 }
  0x1b   : > { %p434_p10 = por %p433_p8, %p432_p7 }
  0x1d   : > { %p435_p9 = pnand %p434_p10, %p428_p3 }
  0x1f   : > { %438 = shalt.err (!%p435_p9)
}
  0x20   : > { %s439_s13 = scalar_lea.vmem %s609_s27, 4096  ;;  %s522_s14 = smov [#allocation2]  }
  0x21   : > { %p440_p0 = scmp.ne.s32.totalorder %s609_s27, %s439_s13  ;;  %s444_s16 = sshll.u32 %s522_s14, 4  ;;  %s445_s16 = int_to_ptr.vmem [resolvable:$false] %s444_s16 }
  0x22   : > { %s446_s20 = scalar_lea.vmem %s445_s16, 8192  ;;  %p447_p11 = scmp.lt.s32.totalorder %s609_s27, %s445_s16 }
  0x23   : > { %p442_p2 = pnand %p440_p0, %p426_p1  ;;  %p448_p4 = scmp.lt.s32.totalorder %s446_s20, %s439_s13 }
  0x25   : > { %p443_p12 = pneg %p442_p2  ;;  %p449_p5 = por %p448_p4, %p447_p11 }
  0x27   : > { %p450_p7 = pnand %p449_p5, %p443_p12 }
  0x29   : > { %453 = shalt.err (!%p450_p7)
}
  0x2a   : > { %s523_s21 = smov 512   ;;  %s524_s22 = smov 32  }
  0x2b   : > { %381 = dma.hbm_to_vmem [thread:$0]  (!%p605_p13), %s601_s25, 4096, %s609_s27, %s611_s29, %s523_s21, %s523_s21, %s524_s22  }
  0x2c   : > { %p361_p9 = scmp.ge.s32.totalorder %s520_s9, 1  ;;  %p107_p1 = scmp.lt.s32.totalorder %s520_s9, 3 }
  0x2e   : > { %p108_p3 = pnand %p361_p9, %p107_p1 }
  0x2f   : > { %s642_s23 = sand.u32 (!%p108_p3), 1, %s512_s7  }
  0x30   : > { %111 = sbr.rel (%p108_p3) target bundleno = 100 (0x64), region = 24  ;;  %s362_s24 = sshll.u32 (!%p108_p3), %s642_s23, 8 }
  0x31   : > { %s114_s26 = scalar_lea.sflag (!%p108_p3), [#allocation3], %s642_s23  ;;  %s648_s30 = scalar_lea.vmem (!%p108_p3), [#allocation2], %s362_s24 }
  0x37   : > { %499 = dma.done.wait (%p581_p6), %s114_s26, 4096  }
  0x38   : > { %501 = vsyncadd (%p581_p6), %s114_s26, 4294963200  ;;  %v138_v0 = vld [vmem:[%s648_s30] sm:$0xff]  ;;  %v139_v1 = vld [vmem:[%s648_s30 + $0x8] sm:$0xff]  ;;  %s373_s25 = sshll.u32 %s559_s10, 12  ;;  %s670_s17 = scalar_lea.vmem [#allocation5], %s362_s24 }
  0x39   : > { %v140_v2 = vld [vmem:[%s648_s30 + $0x10] sm:$0xff]  ;;  %v170_v3 = vmul.f32 2.0, %v138_v0  ;;  %v171_v4 = vmul.f32 2.0, %v139_v1  ;;  %v141_v6 = vld [vmem:[%s648_s30 + $0x18] sm:$0xff]  ;;  %v142_v7 = vld [vmem:[%s648_s30 + $0x20] sm:$0xff]  ;;  %s281_s27 = sshll.u32 %s670_s17, 4  ;;  %s724_s2 = scalar_lea.hbm %s776_s1, %s373_s25  ;;  %s726_s27 = int_to_ptr.vmem [resolvable:$true] %s281_s27 }
  0x3a   : > { %v172_v5 = vmul.f32 2.0, %v140_v2  ;;  %v143_v8 = vld [vmem:[%s648_s30 + $0x28] sm:$0xff]  ;;  %v173_v9 = vmul.f32 2.0, %v141_v6  ;;  %v174_v10 = vmul.f32 2.0, %v142_v7  ;;  %v144_v12 = vld [vmem:[%s648_s30 + $0x30] sm:$0xff]  ;;  %v145_v13 = vld [vmem:[%s648_s30 + $0x38] sm:$0xff] }
  0x3b   : > { %v175_v11 = vmul.f32 2.0, %v143_v8  ;;  %v146_v14 = vld [vmem:[%s648_s30 + $0x40] sm:$0xff]  ;;  %v202_v15 = vadd.f32 1.0, %v170_v3  ;;  %v203_v16 = vadd.f32 1.0, %v171_v4  ;;  %v176_v18 = vmul.f32 2.0, %v144_v12  ;;  %v147_v19 = vld [vmem:[%s648_s30 + $0x48] sm:$0xff] }
  0x3c   : > { %v204_v17 = vadd.f32 1.0, %v172_v5  ;;  %v148_v20 = vld [vmem:[%s648_s30 + $0x50] sm:$0xff]  ;;  %v205_v21 = vadd.f32 1.0, %v173_v9  ;;  %v206_v22 = vadd.f32 1.0, %v174_v10  ;;  %v177_v24 = vmul.f32 2.0, %v145_v13  ;;  %v149_v25 = vld [vmem:[%s648_s30 + $0x58] sm:$0xff] }
  0x3d   : > { %v207_v23 = vadd.f32 1.0, %v175_v11  ;;  %v150_v26 = vld [vmem:[%s648_s30 + $0x60] sm:$0xff]  ;;  %234 = vst [vmem:[%s670_s17] sm:$0xff] %v202_v15  ;;  %235 = vst [vmem:[%s670_s17 + $0x8] sm:$0xff] %v203_v16  ;;  %v208_v27 = vadd.f32 1.0, %v176_v18  ;;  %v178_v28 = vmul.f32 2.0, %v146_v14  ;;  %v179_v29 = vmul.f32 2.0, %v147_v19 }
  0x3e   : > { %236 = vst [vmem:[%s670_s17 + $0x10] sm:$0xff] %v204_v17  ;;  %v180_v30 = vmul.f32 2.0, %v148_v20  ;;  %v151_v31 = vld [vmem:[%s648_s30 + $0x68] sm:$0xff]  ;;  %v152_v32 = vld [vmem:[%s648_s30 + $0x70] sm:$0xff]  ;;  %237 = vst [vmem:[%s670_s17 + $0x18] sm:$0xff] %v205_v21  ;;  %v209_v33 = vadd.f32 1.0, %v177_v24 }
  0x3f   : > { %238 = vst [vmem:[%s670_s17 + $0x20] sm:$0xff] %v206_v22  ;;  %239 = vst [vmem:[%s670_s17 + $0x28] sm:$0xff] %v207_v23  ;;  %v181_v34 = vmul.f32 2.0, %v149_v25  ;;  %v182_v35 = vmul.f32 2.0, %v150_v26  ;;  %v183_v36 = vmul.f32 2.0, %v151_v31  ;;  %v153_v37 = vld [vmem:[%s648_s30 + $0x78] sm:$0xff] }
  0x40   : > { %v154_v38 = vld [vmem:[%s648_s30 + $0x80] sm:$0xff]  ;;  %240 = vst [vmem:[%s670_s17 + $0x30] sm:$0xff] %v208_v27  ;;  %v210_v39 = vadd.f32 1.0, %v178_v28  ;;  %v211_v40 = vadd.f32 1.0, %v179_v29  ;;  %v212_v41 = vadd.f32 1.0, %v180_v30  ;;  %v184_v42 = vmul.f32 2.0, %v152_v32 }
  0x41   : > { %v155_v43 = vld [vmem:[%s648_s30 + $0x88] sm:$0xff]  ;;  %v156_v44 = vld [vmem:[%s648_s30 + $0x90] sm:$0xff]  ;;  %241 = vst [vmem:[%s670_s17 + $0x38] sm:$0xff] %v209_v33  ;;  %v213_v45 = vadd.f32 1.0, %v181_v34  ;;  %v214_v46 = vadd.f32 1.0, %v182_v35  ;;  %v215_v47 = vadd.f32 1.0, %v183_v36 }
  0x42   : > { %v185_v48 = vmul.f32 2.0, %v153_v37  ;;  %v157_v49 = vld [vmem:[%s648_s30 + $0x98] sm:$0xff]  ;;  %v158_v50 = vld [vmem:[%s648_s30 + $0xa0] sm:$0xff]  ;;  %242 = vst [vmem:[%s670_s17 + $0x40] sm:$0xff] %v210_v39  ;;  %243 = vst [vmem:[%s670_s17 + $0x48] sm:$0xff] %v211_v40  ;;  %v216_v51 = vadd.f32 1.0, %v184_v42 }
  0x43   : > { %244 = vst [vmem:[%s670_s17 + $0x50] sm:$0xff] %v212_v41  ;;  %v186_v52 = vmul.f32 2.0, %v154_v38  ;;  %v187_v53 = vmul.f32 2.0, %v155_v43  ;;  %v188_v54 = vmul.f32 2.0, %v156_v44  ;;  %v159_v55 = vld [vmem:[%s648_s30 + $0xa8] sm:$0xff]  ;;  %v160_v56 = vld [vmem:[%s648_s30 + $0xb0] sm:$0xff] }
  0x44   : > { %245 = vst [vmem:[%s670_s17 + $0x58] sm:$0xff] %v213_v45  ;;  %246 = vst [vmem:[%s670_s17 + $0x60] sm:$0xff] %v214_v46  ;;  %v217_v57 = vadd.f32 1.0, %v185_v48  ;;  %v189_v58 = vmul.f32 2.0, %v157_v49  ;;  %v190_v59 = vmul.f32 2.0, %v158_v50  ;;  %v191_v60 = vmul.f32 2.0, %v159_v55 }
  0x45   : > { %247 = vst [vmem:[%s670_s17 + $0x68] sm:$0xff] %v215_v47  ;;  %v161_v61 = vld [vmem:[%s648_s30 + $0xb8] sm:$0xff]  ;;  %v162_v62 = vld [vmem:[%s648_s30 + $0xc0] sm:$0xff]  ;;  %248 = vst [vmem:[%s670_s17 + $0x70] sm:$0xff] %v216_v51  ;;  %v218_v63 = vadd.f32 1.0, %v186_v52  ;;  %v219_v0 = vadd.f32 1.0, %v187_v53 }
  0x46   : > { %v220_v1 = vadd.f32 1.0, %v188_v54  ;;  %v192_v2 = vmul.f32 2.0, %v160_v56  ;;  %v163_v3 = vld [vmem:[%s648_s30 + $0xc8] sm:$0xff]  ;;  %v164_v4 = vld [vmem:[%s648_s30 + $0xd0] sm:$0xff]  ;;  %249 = vst [vmem:[%s670_s17 + $0x78] sm:$0xff] %v217_v57  ;;  %v221_v5 = vadd.f32 1.0, %v189_v58 }
  0x47   : > { %v222_v6 = vadd.f32 1.0, %v190_v59  ;;  %v223_v7 = vadd.f32 1.0, %v191_v60  ;;  %v193_v8 = vmul.f32 2.0, %v161_v61  ;;  %v165_v9 = vld [vmem:[%s648_s30 + $0xd8] sm:$0xff]  ;;  %v166_v10 = vld [vmem:[%s648_s30 + $0xe0] sm:$0xff]  ;;  %250 = vst [vmem:[%s670_s17 + $0x80] sm:$0xff] %v218_v63 }
  0x48   : > { %251 = vst [vmem:[%s670_s17 + $0x88] sm:$0xff] %v219_v0  ;;  %252 = vst [vmem:[%s670_s17 + $0x90] sm:$0xff] %v220_v1  ;;  %v224_v11 = vadd.f32 1.0, %v192_v2  ;;  %v194_v12 = vmul.f32 2.0, %v162_v62  ;;  %v195_v13 = vmul.f32 2.0, %v163_v3  ;;  %v196_v14 = vmul.f32 2.0, %v164_v4 }
  0x49   : > { %v167_v15 = vld [vmem:[%s648_s30 + $0xe8] sm:$0xff]  ;;  %v168_v16 = vld [vmem:[%s648_s30 + $0xf0] sm:$0xff]  ;;  %253 = vst [vmem:[%s670_s17 + $0x98] sm:$0xff] %v221_v5  ;;  %254 = vst [vmem:[%s670_s17 + $0xa0] sm:$0xff] %v222_v6  ;;  %v225_v17 = vadd.f32 1.0, %v193_v8  ;;  %v197_v18 = vmul.f32 2.0, %v165_v9 }
  0x4a   : > { %255 = vst [vmem:[%s670_s17 + $0xa8] sm:$0xff] %v223_v7  ;;  %v198_v19 = vmul.f32 2.0, %v166_v10  ;;  %v199_v20 = vmul.f32 2.0, %v167_v15  ;;  %v169_v21 = vld [vmem:[%s648_s30 + $0xf8] sm:$0xff]  ;;  %256 = vst [vmem:[%s670_s17 + $0xb0] sm:$0xff] %v224_v11  ;;  %v226_v22 = vadd.f32 1.0, %v194_v12 }
  0x4b   : > { %v227_v23 = vadd.f32 1.0, %v195_v13  ;;  %v228_v24 = vadd.f32 1.0, %v196_v14  ;;  %v200_v25 = vmul.f32 2.0, %v168_v16  ;;  %257 = vst [vmem:[%s670_s17 + $0xb8] sm:$0xff] %v225_v17  ;;  %v229_v26 = vadd.f32 1.0, %v197_v18  ;;  %s267_s3 = scalar_lea.sflag [#allocation4], %s642_s23 }
  0x4c   : > { %v230_v27 = vadd.f32 1.0, %v198_v19  ;;  %v231_v28 = vadd.f32 1.0, %v199_v20  ;;  %v201_v29 = vmul.f32 2.0, %v169_v21  ;;  %258 = vst [vmem:[%s670_s17 + $0xc0] sm:$0xff] %v226_v22  ;;  %s454_s4 = scalar_lea.vmem %s726_s27, 4096  ;;  %p783_p11 = scmp.ne.s32.totalorder %s780_s18, 0 }
  0x4d   : > { %259 = vst [vmem:[%s670_s17 + $0xc8] sm:$0xff] %v227_v23  ;;  %260 = vst [vmem:[%s670_s17 + $0xd0] sm:$0xff] %v228_v24  ;;  %v232_v30 = vadd.f32 1.0, %v200_v25  ;;  %p455_p6 = scmp.ne.s32.totalorder %s726_s27, %s454_s4  ;;  %s525_s10 = smov [#allocation5]  }
  0x4e   : > { %261 = vst [vmem:[%s670_s17 + $0xd8] sm:$0xff] %v229_v26  ;;  %262 = vst [vmem:[%s670_s17 + $0xe0] sm:$0xff] %v230_v27  ;;  %v233_v31 = vadd.f32 1.0, %v201_v29  ;;  %s458_s5 = sshll.u32 %s525_s10, 4  ;;  %s459_s5 = int_to_ptr.vmem [resolvable:$false] %s458_s5 }
  0x4f   : > { %263 = vst [vmem:[%s670_s17 + $0xe8] sm:$0xff] %v231_v28  ;;  %264 = vst [vmem:[%s670_s17 + $0xf0] sm:$0xff] %v232_v30  ;;  %p456_p12 = pnand %p455_p6, %p783_p11  ;;  %s460_s11 = scalar_lea.vmem %s459_s5, 8192 }
  0x50   : > { %265 = vst [vmem:[%s670_s17 + $0xf8] sm:$0xff] %v233_v31  ;;  %p461_p8 = scmp.lt.s32.totalorder %s726_s27, %s459_s5  ;;  %p462_p10 = scmp.lt.s32.totalorder %s460_s11, %s454_s4 }
  0x51   : > { %p457_p13 = pneg %p456_p12 }
  0x52   : > { %p463_p0 = por %p462_p10, %p461_p8 }
  0x54   : > { %p464_p2 = pnand %p463_p0, %p457_p13 }
  0x56   : > { %467 = shalt.err (!%p464_p2)
}
  0x57   : > { %s468_s13 = scalar_lea.hbm %s724_s2, 4096  ;;  %s472_s20 = scalar_lea.hbm %s776_s1, 8192 }
  0x58   : > { %p469_p4 = scmp.ne.s32.totalorder %s724_s2, %s468_s13  ;;  %p473_p9 = scmp.lt.u32.totalorder %s724_s2, %s776_s1 }
  0x59   : > { %p474_p1 = scmp.lt.u32.totalorder %s472_s20, %s468_s13  ;;  %p476_p6 = scmp.lt.u32.totalorder %s468_s13, %s724_s2 }
  0x5a   : > { %p470_p5 = pnand %p469_p4, %p783_p11 }
  0x5b   : > { %p475_p3 = por %p474_p1, %p473_p9 }
  0x5c   : > { %p471_p7 = pneg %p470_p5 }
  0x5d   : > { %p477_p12 = por %p476_p6, %p475_p3 }
  0x5f   : > { %p478_p13 = pnand %p477_p12, %p471_p7 }
  0x61   : > { %481 = shalt.err (!%p478_p13)
}
  0x62   : > { %s526_s24 = smov 512   ;;  %s527_s26 = smov 32  }
  0x63   : > { %376 = dma.vmem_to_hbm [thread:$0]  (%p783_p11), %s726_s27, 4096, %s724_s2, %s267_s3, %s526_s24, %s526_s24, %s527_s26  }
  0x64 PF: > { %s296_s30 = sand.u32 1, %s508_s6   ;;  %p784_p8 = scmp.ne.s32.totalorder %s781_s19, 0 }
  0x65   : > { %p785_p10 = scmp.ge.s32.totalorder %s520_s9, 2  ;;  %s297_s25 = scalar_lea.sflag [#allocation4], %s296_s30 }
  0x67   : > { %p383_p0 = pnand %p785_p10, %p784_p8 }
  0x69   : > { %503 = dma.done.wait (!%p383_p0), %s297_s25, 4096  }
  0x6a   : > { %505 = vsyncadd (!%p383_p0), %s297_s25, 4294963200  ;;  %p14_p2 = scmp.ge.s32.totalorder %s563_s12, 4   ;;  %s786_s6 = smov %s512_s7 }
  0x6b   : > { %s787_s7 = smov %s516_s8  ;;  %s788_s8 = smov %s575_s15 }
  0x6c   : > { %s789_s9 = smov %s563_s12  ;;  %16 = sbr.rel (!%p14_p2) target bundleno = 5 (0x5), region = 69 }
  0x73   :  { %302 = vsyncpa [#allocation3], 1 }
  0x74   :  { %304 = vsyncpa [#allocation3 + $0x1], 1 }
  0x75   :  { %305 = vsyncpa [#allocation4], 1 }
  0x76   :  { %307 = vsyncpa [#allocation4 + $0x1], 1 }

</bundles_post_ra>
